<compile_context>
chip_gen: v7x
topology: tpu7x:2x2x1
jax: 0.10.0
libtpu: 0.0.40
codegen_flags: <defaults>
</compile_context>

<pallas_src>
import functools

import jax
import jax.numpy as jnp
from jax import lax
from jax.experimental import pallas as pl
from jax.experimental.pallas import tpu as pltpu


def _cma_kernel(q_ref, k_ref, v_ref,
                wq_ref, bq_ref, wk_ref, bk_ref, wv_ref, bv_ref,
                ctx_ref, attn_ref,
                kp_ref, vp_ref,
                *, scale, compute_dtype):
    # Block shapes: q (1, TQ, E); k/v (1, S, E); W (E, E); b (1, E);
    #               ctx (1, TQ, E); attn (1, TQ, S); kp/vp scratch (S, E).
    cdt = compute_dtype
    qi = pl.program_id(1)

    # K / V projections: computed once per batch element (first query tile)
    # and cached in VMEM scratch -- reused by every subsequent query tile.
    @pl.when(qi == 0)
    def _():
        kp = jnp.dot(k_ref[0], wk_ref[...],
                     preferred_element_type=jnp.float32) + bk_ref[...]
        vp = jnp.dot(v_ref[0], wv_ref[...],
                     preferred_element_type=jnp.float32) + bv_ref[...]
        kp_ref[...] = kp.astype(cdt)
        vp_ref[...] = vp.astype(cdt)

    # Q projection for this query tile; fold 1/sqrt(E) into the small tile.
    qp = jnp.dot(q_ref[0], wq_ref[...],
                 preferred_element_type=jnp.float32) + bq_ref[...]
    qp = qp * scale

    # Scores (TQ, S): contract embedding dims directly (canonical attention
    # contraction; no materialized kp.T transpose through the XLU).
    scores = lax.dot_general(
        qp.astype(cdt), kp_ref[...],
        dimension_numbers=(((1,), (1,)), ((), ())),
        preferred_element_type=jnp.float32)

    # Numerically stable, *exact* softmax along the key axis (matches
    # nn.Softmax(dim=-1); rows sum to 1 since the weights are user-visible).
    scores = scores - jnp.max(scores, axis=-1, keepdims=True)
    e = jnp.exp(scores)
    weights = e / jnp.sum(e, axis=-1, keepdims=True)

    # Context (TQ, E).
    context = jnp.dot(weights.astype(cdt), vp_ref[...],
                      preferred_element_type=jnp.float32)

    ctx_ref[0] = context.astype(ctx_ref.dtype)
    attn_ref[0] = weights.astype(attn_ref.dtype)


def _vmem_budget_bytes():
    """Physical VMEM capacity with ~15% headroom for Mosaic internal scratch."""
    try:
        cap = int(pltpu.get_tpu_info().vmem_capacity_bytes)
    except Exception:
        cap = 64 * 2**20          # conservative fallback: v7x physical VMEM
    return int(cap * 0.85)


def _block_bytes(tq, s, e, cb, ctx_bytes, attn_bytes):
    """Approximate resident VMEM per grid step: double-buffered blocks,
    scratch cache, and in-kernel f32 intermediates."""
    f32 = 4
    return int(
        2 * tq * e * cb               # q input blocks
        + 2 * 2 * s * e * cb          # k, v input blocks
        + 3 * 2 * e * e * cb          # projection weight blocks
        + 3 * 2 * e * f32             # bias blocks
        + 2 * tq * e * ctx_bytes      # context output blocks
        + 2 * tq * s * attn_bytes     # attention-weights output blocks
        + 2 * s * e * cb              # kp / vp scratch cache
        + (tq * e + 2 * s * e) * f32  # f32 projection intermediates
        + 3 * tq * s * f32            # scores / exp / weights intermediates
    )


def _pick_query_tile(s, tq_max):
    """Query-tile size <= tq_max: prefer MXU-sized tiles (multiples of 256,
    then 128) that divide S, then any multiple of 8 that divides S, otherwise
    an MXU-sized tile with query-axis padding.  Never falls back to TQ == S
    for awkward large S."""
    if s <= tq_max:
        return s
    for step in (256, 128):
        t = (tq_max // step) * step
        while t >= step:
            if s % t == 0:
                return t
            t -= step
    for t in range((min(tq_max, s) // 8) * 8, 7, -8):
        if s % t == 0:
            return t
    for step in (256, 128, 8):
        t = (tq_max // step) * step
        if t >= step:
            return t                 # pad the query axis to a multiple of t
    return max(8, min(s, tq_max))


def cross_modal_attention(query, key, value, params, *,
                          compute_dtype=jnp.bfloat16, tq_max=256,
                          attn_dtype=jnp.float32):
    """Pallas implementation of CrossModalAttention.forward.

    query/key/value: (B, S, E) float32.
    params: dict with wq, bq, wk, bk, wv, bv in PyTorch nn.Linear layout
            (W: (E_out, E_in), b: (E,)).
    compute_dtype: MXU operand dtype (bf16 default; accumulation is f32).
    attn_dtype: dtype of the returned attention weights (f32 matches PyTorch;
                pass bf16 to halve the (B, S, S) writeback when tolerable).
    Returns (context (B, S, E), attention_weights (B, S, S)).
    """
    B, S, E = query.shape
    assert key.shape == (B, S, E) and value.shape == (B, S, E)

    out_dtype = query.dtype
    cb = jnp.dtype(compute_dtype).itemsize
    ctx_bytes = jnp.dtype(out_dtype).itemsize
    attn_bytes = jnp.dtype(attn_dtype).itemsize

    # Hardware-derived VMEM budget: shrink TQ to fit rather than over-raising
    # the scoped limit (keeps double-buffering alive on v7x's 64 MiB).
    budget = _vmem_budget_bytes()
    TQ = _pick_query_tile(S, tq_max)
    while TQ > 8 and _block_bytes(TQ, S, E, cb, ctx_bytes, attn_bytes) > budget:
        TQ = max(8, ((TQ // 2 + 7) // 8) * 8)
    # TODO(synk): if even TQ=8 exceeds the budget (very large S*E), the full
    # K/V residency itself no longer fits and a key-tiled flash-style variant
    # (online softmax over a key grid axis) would be required.

    n_q = pl.cdiv(S, TQ)
    S_pad = n_q * TQ

    # Glue: cast activations to the MXU compute dtype before the BlockSpecs
    # (halves K/V block residency + DMA when bf16); weights pre-transposed into
    # "x @ W" orientation; biases (1, E) f32 (added in the f32 accumulator).
    qc = query.astype(compute_dtype)
    kc = key.astype(compute_dtype)
    vc = value.astype(compute_dtype)
    if S_pad != S:
        qc = jnp.pad(qc, ((0, 0), (0, S_pad - S), (0, 0)))
    wq = params["wq"].T.astype(compute_dtype)
    wk = params["wk"].T.astype(compute_dtype)
    wv = params["wv"].T.astype(compute_dtype)
    bq = params["bq"].astype(jnp.float32).reshape(1, E)
    bk = params["bk"].astype(jnp.float32).reshape(1, E)
    bv = params["bv"].astype(jnp.float32).reshape(1, E)

    kernel = functools.partial(_cma_kernel,
                               scale=1.0 / (float(E) ** 0.5),
                               compute_dtype=compute_dtype)

    q_spec = pl.BlockSpec((1, TQ, E), lambda b, qi: (b, qi, 0))
    kv_spec = pl.BlockSpec((1, S, E), lambda b, qi: (b, 0, 0))   # reused over qi
    w_spec = pl.BlockSpec((E, E), lambda b, qi: (0, 0))          # DMA'd once
    b_spec = pl.BlockSpec((1, E), lambda b, qi: (0, 0))

    grid_spec = pltpu.PrefetchScalarGridSpec(
        num_scalar_prefetch=0,
        grid=(B, n_q),
        in_specs=[q_spec, kv_spec, kv_spec,
                  w_spec, b_spec, w_spec, b_spec, w_spec, b_spec],
        out_specs=[pl.BlockSpec((1, TQ, E), lambda b, qi: (b, qi, 0)),
                   pl.BlockSpec((1, TQ, S), lambda b, qi: (b, qi, 0))],
        scratch_shapes=[pltpu.VMEM((S, E), compute_dtype),   # kp cache
                        pltpu.VMEM((S, E), compute_dtype)],  # vp cache
    )

    out_shapes = (
        jax.ShapeDtypeStruct((B, S_pad, E), out_dtype),
        jax.ShapeDtypeStruct((B, S_pad, S), attn_dtype),
    )

    block_bytes = _block_bytes(TQ, S, E, cb, ctx_bytes, attn_bytes)
    vmem_limit = int(min(budget, max(32 * 2**20, 2 * block_bytes)))

    context, attn = pl.pallas_call(
        kernel,
        grid_spec=grid_spec,
        out_shape=out_shapes,
        compiler_params=pltpu.CompilerParams(
            # Batch axis stays "parallel" (megacore / 2-TC sharding on v7x);
            # the query-tile axis must be "arbitrary" because of the per-batch
            # K/V projection cache in scratch.
            dimension_semantics=("parallel", "arbitrary"),
            vmem_limit_bytes=vmem_limit),
    )(qc, kc, vc, wq, bq, wk, bk, wv, bv)

    if S_pad != S:
        context = context[:, :S]
        attn = attn[:, :S]
    return context, attn


def _reference(query, key, value, params):
    # Pure-JAX reference mirroring the PyTorch forward pass exactly (f32).
    q = query @ params["wq"].T + params["bq"]
    k = key @ params["wk"].T + params["bk"]
    v = value @ params["wv"].T + params["bv"]
    scores = jnp.einsum("bqe,bke->bqk", q, k) / (k.shape[-1] ** 0.5)
    w = jax.nn.softmax(scores, axis=-1)
    ctx = jnp.einsum("bqk,bke->bqe", w, v)
    return ctx, w


def _make_inputs(key, B, S, E):
    ks = jax.random.split(key, 9)
    query = jax.random.normal(ks[0], (B, S, E), dtype=jnp.float32)
    key_in = jax.random.normal(ks[1], (B, S, E), dtype=jnp.float32)
    value = jax.random.normal(ks[2], (B, S, E), dtype=jnp.float32)
    lim = 1.0 / (E ** 0.5)  # nn.Linear default init range
    params = {
        "wq": jax.random.uniform(ks[3], (E, E), jnp.float32, -lim, lim),
        "bq": jax.random.uniform(ks[4], (E,), jnp.float32, -lim, lim),
        "wk": jax.random.uniform(ks[5], (E, E), jnp.float32, -lim, lim),
        "bk": jax.random.uniform(ks[6], (E,), jnp.float32, -lim, lim),
        "wv": jax.random.uniform(ks[7], (E, E), jnp.float32, -lim, lim),
        "bv": jax.random.uniform(ks[8], (E,), jnp.float32, -lim, lim),
    }
    return query, key_in, value, params


if __name__ == "__main__":
    root = jax.random.PRNGKey(0)
    k1, k2 = jax.random.split(root)

    # --- Test 1: module-sized toy shapes, bf16 MXU operands (perf default). ---
    B, S, E = 2, 8, 32
    q1, kk1, v1, p1 = _make_inputs(k1, B, S, E)
    ctx, attn = cross_modal_attention(q1, kk1, v1, p1)  # compute_dtype=bf16
    jax.block_until_ready((ctx, attn))
    ctx_r, attn_r = _reference(q1, kk1, v1, p1)
    assert ctx.shape == (B, S, E) and attn.shape == (B, S, S)
    assert jnp.allclose(ctx, ctx_r, atol=1e-1, rtol=5e-2)
    assert jnp.allclose(attn, attn_r, atol=3e-2, rtol=5e-2)
    assert jnp.allclose(jnp.sum(attn, axis=-1), 1.0, atol=1e-3)

    # --- Test 2: tiled query axis (TQ=128 < S) + per-batch K/V projection
    #     cache reuse, f32 MXU operands. ---
    B2, S2, E2 = 2, 256, 128
    q2, kk2, v2, p2 = _make_inputs(k2, B2, S2, E2)
    ctx2, attn2 = cross_modal_attention(q2, kk2, v2, p2,
                                        compute_dtype=jnp.float32, tq_max=128)
    jax.block_until_ready((ctx2, attn2))
    ctx2_r, attn2_r = _reference(q2, kk2, v2, p2)
    assert ctx2.shape == (B2, S2, E2) and attn2.shape == (B2, S2, S2)
    assert jnp.allclose(ctx2, ctx2_r, atol=5e-2, rtol=5e-2)
    assert jnp.allclose(attn2, attn2_r, atol=5e-3, rtol=5e-2)
    assert jnp.allclose(jnp.sum(attn2, axis=-1), 1.0, atol=1e-3)

    print("KERNEL_OK")
</pallas_src>

<mosaic_0001>
module attributes {stable_mosaic.version = 11 : i64} {
  func.func @_cma_kernel(%arg0: i32, %arg1: i32, %arg2: memref<1x8x32xbf16, #tpu.memory_space<vmem>>, %arg3: memref<1x8x32xbf16, #tpu.memory_space<vmem>>, %arg4: memref<1x8x32xbf16, #tpu.memory_space<vmem>>, %arg5: memref<32x32xbf16, #tpu.memory_space<vmem>>, %arg6: memref<1x32xf32, #tpu.memory_space<vmem>>, %arg7: memref<32x32xbf16, #tpu.memory_space<vmem>>, %arg8: memref<1x32xf32, #tpu.memory_space<vmem>>, %arg9: memref<32x32xbf16, #tpu.memory_space<vmem>>, %arg10: memref<1x32xf32, #tpu.memory_space<vmem>>, %arg11: memref<1x8x32xf32, #tpu.memory_space<vmem>>, %arg12: memref<1x8x8xf32, #tpu.memory_space<vmem>>, %arg13: memref<8x32xbf16, #tpu.memory_space<vmem>>, %arg14: memref<8x32xbf16, #tpu.memory_space<vmem>>) attributes {dimension_semantics = [#tpu.dimension_semantics<parallel>, #tpu.dimension_semantics<arbitrary>], iteration_bounds = array<i64: 2, 1>, scalar_prefetch = 0 : i64, scratch_operands = 2 : i64, tpu.core_type = #tpu.core_type<tc>, window_params = [{transform_indices = @transform_0, window_bounds = array<i64: 1, 8, 32>}, {transform_indices = @transform_1, window_bounds = array<i64: 1, 8, 32>}, {transform_indices = @transform_2, window_bounds = array<i64: 1, 8, 32>}, {pipeline_mode = #tpu.pipeline_mode<synchronous>, transform_indices = @transform_3, window_bounds = array<i64: 32, 32>}, {pipeline_mode = #tpu.pipeline_mode<synchronous>, transform_indices = @transform_4, window_bounds = array<i64: 1, 32>}, {pipeline_mode = #tpu.pipeline_mode<synchronous>, transform_indices = @transform_5, window_bounds = array<i64: 32, 32>}, {pipeline_mode = #tpu.pipeline_mode<synchronous>, transform_indices = @transform_6, window_bounds = array<i64: 1, 32>}, {pipeline_mode = #tpu.pipeline_mode<synchronous>, transform_indices = @transform_7, window_bounds = array<i64: 32, 32>}, {pipeline_mode = #tpu.pipeline_mode<synchronous>, transform_indices = @transform_8, window_bounds = array<i64: 1, 32>}, {transform_indices = @transform_9, window_bounds = array<i64: 1, 8, 32>}, {transform_indices = @transform_10, window_bounds = array<i64: 1, 8, 8>}]} {
    %c0_i32 = arith.constant 0 : i32
    %0 = arith.cmpi eq, %arg1, %c0_i32 : i32
    %1 = arith.extui %0 : i1 to i32
    %c0_i32_0 = arith.constant 0 : i32
    %2 = arith.cmpi ne, %1, %c0_i32_0 : i32
    scf.if %2 {
      %c0_22 = arith.constant 0 : index
      %c0_23 = arith.constant 0 : index
      %c0_24 = arith.constant 0 : index
      %33 = vector.load %arg3[%c0_22, %c0_23, %c0_24] : memref<1x8x32xbf16, #tpu.memory_space<vmem>>, vector<1x8x32xbf16>
      %34 = vector.shape_cast %33 : vector<1x8x32xbf16> to vector<8x32xbf16>
      %c0_25 = arith.constant 0 : index
      %c0_26 = arith.constant 0 : index
      %35 = vector.load %arg7[%c0_25, %c0_26] : memref<32x32xbf16, #tpu.memory_space<vmem>>, vector<32x32xbf16>
      %cst_27 = arith.constant dense<0.000000e+00> : vector<8x32xf32>
      %36 = tpu.matmul %34, %35, %cst_27 {dimension_numbers = #tpu.dot_dimension_numbers<[1], [0], [0], [1], [0, 0, 1, 1], [], []>} : vector<8x32xbf16>, vector<32x32xbf16>, vector<8x32xf32> -> vector<8x32xf32>
      %c0_28 = arith.constant 0 : index
      %c0_29 = arith.constant 0 : index
      %37 = vector.load %arg8[%c0_28, %c0_29] : memref<1x32xf32, #tpu.memory_space<vmem>>, vector<1x32xf32>
      %38 = vector.broadcast %37 : vector<1x32xf32> to vector<8x32xf32>
      %39 = arith.addf %36, %38 : vector<8x32xf32>
      %c0_30 = arith.constant 0 : index
      %c0_31 = arith.constant 0 : index
      %c0_32 = arith.constant 0 : index
      %40 = vector.load %arg4[%c0_30, %c0_31, %c0_32] : memref<1x8x32xbf16, #tpu.memory_space<vmem>>, vector<1x8x32xbf16>
      %41 = vector.shape_cast %40 : vector<1x8x32xbf16> to vector<8x32xbf16>
      %c0_33 = arith.constant 0 : index
      %c0_34 = arith.constant 0 : index
      %42 = vector.load %arg9[%c0_33, %c0_34] : memref<32x32xbf16, #tpu.memory_space<vmem>>, vector<32x32xbf16>
      %cst_35 = arith.constant dense<0.000000e+00> : vector<8x32xf32>
      %43 = tpu.matmul %41, %42, %cst_35 {dimension_numbers = #tpu.dot_dimension_numbers<[1], [0], [0], [1], [0, 0, 1, 1], [], []>} : vector<8x32xbf16>, vector<32x32xbf16>, vector<8x32xf32> -> vector<8x32xf32>
      %c0_36 = arith.constant 0 : index
      %c0_37 = arith.constant 0 : index
      %44 = vector.load %arg10[%c0_36, %c0_37] : memref<1x32xf32, #tpu.memory_space<vmem>>, vector<1x32xf32>
      %45 = vector.broadcast %44 : vector<1x32xf32> to vector<8x32xf32>
      %46 = arith.addf %43, %45 : vector<8x32xf32>
      %47 = arith.truncf %39 : vector<8x32xf32> to vector<8x32xbf16>
      %c0_38 = arith.constant 0 : index
      %c0_39 = arith.constant 0 : index
      %48 = vector.load %arg13[%c0_38, %c0_39] : memref<8x32xbf16, #tpu.memory_space<vmem>>, vector<8x32xbf16>
      tpu.vector_store %arg13[%c0_38, %c0_39], %47 {strides = array<i32>} : memref<8x32xbf16, #tpu.memory_space<vmem>>, vector<8x32xbf16>,
      %49 = arith.truncf %46 : vector<8x32xf32> to vector<8x32xbf16>
      %c0_40 = arith.constant 0 : index
      %c0_41 = arith.constant 0 : index
      %50 = vector.load %arg14[%c0_40, %c0_41] : memref<8x32xbf16, #tpu.memory_space<vmem>>, vector<8x32xbf16>
      tpu.vector_store %arg14[%c0_40, %c0_41], %49 {strides = array<i32>} : memref<8x32xbf16, #tpu.memory_space<vmem>>, vector<8x32xbf16>,
    } else {
    }
    %c0 = arith.constant 0 : index
    %c0_1 = arith.constant 0 : index
    %c0_2 = arith.constant 0 : index
    %3 = vector.load %arg2[%c0, %c0_1, %c0_2] : memref<1x8x32xbf16, #tpu.memory_space<vmem>>, vector<1x8x32xbf16>
    %4 = vector.shape_cast %3 : vector<1x8x32xbf16> to vector<8x32xbf16>
    %c0_3 = arith.constant 0 : index
    %c0_4 = arith.constant 0 : index
    %5 = vector.load %arg5[%c0_3, %c0_4] : memref<32x32xbf16, #tpu.memory_space<vmem>>, vector<32x32xbf16>
    %cst = arith.constant dense<0.000000e+00> : vector<8x32xf32>
    %6 = tpu.matmul %4, %5, %cst {dimension_numbers = #tpu.dot_dimension_numbers<[1], [0], [0], [1], [0, 0, 1, 1], [], []>} : vector<8x32xbf16>, vector<32x32xbf16>, vector<8x32xf32> -> vector<8x32xf32>
    %c0_5 = arith.constant 0 : index
    %c0_6 = arith.constant 0 : index
    %7 = vector.load %arg6[%c0_5, %c0_6] : memref<1x32xf32, #tpu.memory_space<vmem>>, vector<1x32xf32>
    %8 = vector.broadcast %7 : vector<1x32xf32> to vector<8x32xf32>
    %9 = arith.addf %6, %8 : vector<8x32xf32>
    %cst_7 = arith.constant 0.176776692 : f32
    %10 = vector.broadcast %cst_7 : f32 to vector<8x32xf32>
    %11 = arith.mulf %9, %10 : vector<8x32xf32>
    %12 = arith.truncf %11 : vector<8x32xf32> to vector<8x32xbf16>
    %c0_8 = arith.constant 0 : index
    %c0_9 = arith.constant 0 : index
    %13 = vector.load %arg13[%c0_8, %c0_9] : memref<8x32xbf16, #tpu.memory_space<vmem>>, vector<8x32xbf16>
    %cst_10 = arith.constant dense<0.000000e+00> : vector<8x8xf32>
    %14 = tpu.matmul %12, %13, %cst_10 {dimension_numbers = #tpu.dot_dimension_numbers<[1], [1], [0], [0], [0, 0, 1, 0], [], []>} : vector<8x32xbf16>, vector<8x32xbf16>, vector<8x8xf32> -> vector<8x8xf32>
    %cst_11 = arith.constant dense<0xFF800000> : vector<8xf32>
    %15 = vector.multi_reduction <maximumf>, %14, %cst_11 [1] : vector<8x8xf32> to vector<8xf32>
    %16 = vector.shape_cast %15 : vector<8xf32> to vector<8x1xf32>
    %17 = vector.broadcast %16 : vector<8x1xf32> to vector<8x8xf32>
    %18 = arith.subf %14, %17 : vector<8x8xf32>
    %19 = math.exp %18 : vector<8x8xf32>
    %cst_12 = arith.constant dense<0.000000e+00> : vector<8xf32>
    %20 = vector.multi_reduction <add>, %19, %cst_12 [1] : vector<8x8xf32> to vector<8xf32>
    %21 = vector.shape_cast %20 : vector<8xf32> to vector<8x1xf32>
    %22 = vector.broadcast %21 : vector<8x1xf32> to vector<8x8xf32>
    %23 = arith.divf %19, %22 : vector<8x8xf32>
    %24 = arith.truncf %23 : vector<8x8xf32> to vector<8x8xbf16>
    %c0_13 = arith.constant 0 : index
    %c0_14 = arith.constant 0 : index
    %25 = vector.load %arg14[%c0_13, %c0_14] : memref<8x32xbf16, #tpu.memory_space<vmem>>, vector<8x32xbf16>
    %cst_15 = arith.constant dense<0.000000e+00> : vector<8x32xf32>
    %26 = tpu.matmul %24, %25, %cst_15 {dimension_numbers = #tpu.dot_dimension_numbers<[1], [0], [0], [1], [0, 0, 1, 1], [], []>} : vector<8x8xbf16>, vector<8x32xbf16>, vector<8x32xf32> -> vector<8x32xf32>
    %c0_16 = arith.constant 0 : index
    %c0_17 = arith.constant 0 : index
    %c0_18 = arith.constant 0 : index
    %27 = vector.load %arg11[%c0_16, %c0_17, %c0_18] : memref<1x8x32xf32, #tpu.memory_space<vmem>>, vector<1x8x32xf32>
    %28 = vector.shape_cast %27 : vector<1x8x32xf32> to vector<8x32xf32>
    %29 = vector.shape_cast %26 : vector<8x32xf32> to vector<1x8x32xf32>
    tpu.vector_store %arg11[%c0_16, %c0_17, %c0_18], %29 {strides = array<i32>} : memref<1x8x32xf32, #tpu.memory_space<vmem>>, vector<1x8x32xf32>,
    %c0_19 = arith.constant 0 : index
    %c0_20 = arith.constant 0 : index
    %c0_21 = arith.constant 0 : index
    %30 = vector.load %arg12[%c0_19, %c0_20, %c0_21] : memref<1x8x8xf32, #tpu.memory_space<vmem>>, vector<1x8x8xf32>
    %31 = vector.shape_cast %30 : vector<1x8x8xf32> to vector<8x8xf32>
    %32 = vector.shape_cast %23 : vector<8x8xf32> to vector<1x8x8xf32>
    tpu.vector_store %arg12[%c0_19, %c0_20, %c0_21], %32 {strides = array<i32>} : memref<1x8x8xf32, #tpu.memory_space<vmem>>, vector<1x8x8xf32>,
    return
  }
  func.func @transform_0(%arg0: i32, %arg1: i32) -> (i32, i32, i32) {
    %c0_i32 = arith.constant 0 : i32
    %c0_i32_0 = arith.constant 0 : i32
    return %arg0, %arg1, %c0_i32 : i32, i32, i32
  }
  func.func @transform_1(%arg0: i32, %arg1: i32) -> (i32, i32, i32) {
    %c0_i32 = arith.constant 0 : i32
    %c0_i32_0 = arith.constant 0 : i32
    %c0_i32_1 = arith.constant 0 : i32
    return %arg0, %c0_i32, %c0_i32_0 : i32, i32, i32
  }
  func.func @transform_2(%arg0: i32, %arg1: i32) -> (i32, i32, i32) {
    %c0_i32 = arith.constant 0 : i32
    %c0_i32_0 = arith.constant 0 : i32
    %c0_i32_1 = arith.constant 0 : i32
    return %arg0, %c0_i32, %c0_i32_0 : i32, i32, i32
  }
  func.func @transform_3(%arg0: i32, %arg1: i32) -> (i32, i32) {
    %c0_i32 = arith.constant 0 : i32
    %c0_i32_0 = arith.constant 0 : i32
    %c0_i32_1 = arith.constant 0 : i32
    return %c0_i32, %c0_i32_0 : i32, i32
  }
  func.func @transform_4(%arg0: i32, %arg1: i32) -> (i32, i32) {
    %c0_i32 = arith.constant 0 : i32
    %c0_i32_0 = arith.constant 0 : i32
    %c0_i32_1 = arith.constant 0 : i32
    return %c0_i32, %c0_i32_0 : i32, i32
  }
  func.func @transform_5(%arg0: i32, %arg1: i32) -> (i32, i32) {
    %c0_i32 = arith.constant 0 : i32
    %c0_i32_0 = arith.constant 0 : i32
    %c0_i32_1 = arith.constant 0 : i32
    return %c0_i32, %c0_i32_0 : i32, i32
  }
  func.func @transform_6(%arg0: i32, %arg1: i32) -> (i32, i32) {
    %c0_i32 = arith.constant 0 : i32
    %c0_i32_0 = arith.constant 0 : i32
    %c0_i32_1 = arith.constant 0 : i32
    return %c0_i32, %c0_i32_0 : i32, i32
  }
  func.func @transform_7(%arg0: i32, %arg1: i32) -> (i32, i32) {
    %c0_i32 = arith.constant 0 : i32
    %c0_i32_0 = arith.constant 0 : i32
    %c0_i32_1 = arith.constant 0 : i32
    return %c0_i32, %c0_i32_0 : i32, i32
  }
  func.func @transform_8(%arg0: i32, %arg1: i32) -> (i32, i32) {
    %c0_i32 = arith.constant 0 : i32
    %c0_i32_0 = arith.constant 0 : i32
    %c0_i32_1 = arith.constant 0 : i32
    return %c0_i32, %c0_i32_0 : i32, i32
  }
  func.func @transform_9(%arg0: i32, %arg1: i32) -> (i32, i32, i32) {
    %c0_i32 = arith.constant 0 : i32
    %c0_i32_0 = arith.constant 0 : i32
    return %arg0, %arg1, %c0_i32 : i32, i32, i32
  }
  func.func @transform_10(%arg0: i32, %arg1: i32) -> (i32, i32, i32) {
    %c0_i32 = arith.constant 0 : i32
    %c0_i32_0 = arith.constant 0 : i32
    return %arg0, %arg1, %c0_i32 : i32, i32, i32
  }
}

</mosaic_0001>

<bundles_post_ra>
// kernel: tpu_custom_call.1
= control target key start
LH: loop header
LB: loop body
LE: loop exit
PB: predicated region body
PF: predicated region fallthrough
CT: control target
= control target key end

     0   :  { %s1964_s0 = inlined_call_operand.hbm [shape: bf16[2,8,32], index: 0, kind: input, shape index: {}]   ;;  %s1965_s1 = inlined_call_operand.hbm [shape: bf16[2,8,32], index: 1, kind: input, shape index: {}]   ;;  %s1966_s2 = inlined_call_operand.hbm [shape: bf16[2,8,32], index: 2, kind: input, shape index: {}]   ;;  %s1967_s3 = inlined_call_operand.hbm [shape: bf16[32,32], index: 3, kind: input, shape index: {}]   ;;  %s1968_s4 = inlined_call_operand.vmem [shape: f32[1,32], index: 4, kind: input, shape index: {}]   ;;  %s1969_s5 = inlined_call_operand.vmem [shape: bf16[32,32], index: 5, kind: input, shape index: {}]   ;;  %s1970_s6 = inlined_call_operand.vmem [shape: f32[1,32], index: 6, kind: input, shape index: {}]   ;;  %s1971_s7 = inlined_call_operand.hbm [shape: bf16[32,32], index: 7, kind: input, shape index: {}]   ;;  %s1972_s8 = inlined_call_operand.vmem [shape: f32[1,32], index: 8, kind: input, shape index: {}]   ;;  %s1973_s9 = inlined_call_operand.hbm [shape: f32[2,8,32], index: 9, kind: output, shape index: {0}]   ;;  %s1974_s10 = inlined_call_operand.hbm [shape: f32[2,8,8], index: 10, kind: output, shape index: {1}]  }
   0x1   :  { %1997 = sst [smem:[#allocation27_spill]] %s1965_s1 }
   0x2   :  { %1998 = sst [smem:[#allocation28_spill]] %s1967_s3 }
   0x3   :  { %1999 = sst [smem:[#allocation29_spill]] %s1971_s7 }
   0x4   :  { %2000 = sst [smem:[#allocation30_spill]] %s1973_s9 }
   0x5   :  { %2001 = sst [smem:[#allocation31_spill]] %s1974_s10 }
   0x6   :  { %16 = vsyncpa [#allocation5], 0 }
   0x7   :  { %18 = vsyncpa [#allocation5 + $0x1], 0 }
   0x8   :  { %19 = vsyncpa [#allocation8], 0 }
   0x9   :  { %21 = vsyncpa [#allocation8 + $0x1], 0 }
   0xa   :  { %22 = vsyncpa [#allocation11], 0 }
   0xb   :  { %23 = vsyncpa [#allocation6], 0 }
   0xc   :  { %25 = vsyncpa [#allocation6 + $0x1], 0 }
   0xd   :  { %26 = vsyncpa [#allocation15], 0 }
   0xe   :  { %28 = vsyncpa [#allocation15 + $0x1], 0  ;;  %s1576_s13 = smov 0   ;;  %s1578_s14 = smov 0  }
   0xf   :  { %s1580_s15 = smov 0   ;;  %s1582_s16 = smov 0  }
  0x10   :  { %s1584_s17 = smov 0   ;;  %s1586_s18 = smov 0  }
  0x11 LB: > { %2002 = sst [smem:[#allocation21_spill]] %s1488_s13  ;;  %s1607_s19 = sadd.s32 4294967295, %s1508_s18   ;;  %s1508_s18 = sphi %s1586_s18, %s34_s18   ;;  %s1504_s17 = sphi %s1584_s17, %s2042_s17   ;;  %s1500_s16 = sphi %s1582_s16, %s2041_s16   ;;  %s1496_s15 = sphi %s1580_s15, %s2045_s15   ;;  %s1492_s14 = sphi %s1578_s14, %s2044_s14   ;;  %s1488_s13 = sphi %s1576_s13, %s2043_s13  }
  0x12   : > { %2003 = sst [smem:[#allocation22_spill]] %s1504_s17  ;;  %s1040_s20 = sadd.s32 4294967294, %s1508_s18  }
  0x13   : > { %2004 = sst [smem:[#allocation23_spill]] %s1508_s18  ;;  %p68_p0 = scmp.ne.s32.totalorder %s1492_s14, %s1488_s13 }
  0x14   : > { %p1976_p1 = scmp.eq.s32.totalorder %s1607_s19, 0  ;;  %p278_p3 = scmp.eq.s32.totalorder %s1040_s20, 1 }
  0x15   : > { %p1041_p5 = scmp.ge.s32.totalorder %s1508_s18, 1  ;;  %p313_p7 = scmp.lt.s32.totalorder %s1508_s18, 3 }
  0x16   : > { %p1616_p4 = por %p1976_p1, %p68_p0  ;;  %p1621_p6 = por %p278_p3, %p68_p0 }
  0x17   : > { %p1626_p8 = pnand %p1041_p5, %p313_p7  ;;  %s1510_s24 = smov [#allocation10]  }
  0x18   : > { %s2005_s21 = scalar_select %p1616_p4, 1, 0 }
  0x19   : > { %s2006_s22 = scalar_select %p1621_p6, 1, 0 }
  0x1a   : > { %s2008_s23 = scalar_select %p1626_p8, 1, 0 }
  0x1b   : > { %2007 = sst [smem:[#allocation24_spill]] %s2006_s22  ;;  %s325_s25 = sshll.u32 %s1510_s24, 4  ;;  %s326_s25 = int_to_ptr.vmem [resolvable:$true] %s325_s25 }
  0x1c   : > { %p1146_p9 = pneg %p1626_p8  ;;  %s46_s27 = sadd.s32 1, %s1504_s17 }
  0x1d   : > { %s2010_s3 = sld [smem:[#allocation28_spill]] }
  0x1e   : > { %p1635_p11 = pnand %p1146_p9, %p1976_p1 }
  0x20   : > { %s2009_s26 = scalar_select %p1635_p11, 1, 0 }
  0x21   : > { %p1989_p13 = pneg %p1635_p11 }
  0x23   : > { %s1240_s30 = scalar_lea.hbm %s2010_s3, 256 }
  0x24   : > { %p1241_p12 = scmp.ne.s32.totalorder %s2010_s3, %s1240_s30  ;;  %p1247_p5 = scmp.lt.u32.totalorder %s1240_s30, %s2010_s3 }
  0x26   : > { %p1243_p0 = pnand %p1989_p13, %p1241_p12 }
  0x28   : > { %p1244_p3 = pneg %p1243_p0 }
  0x2a   : > { %p1249_p7 = pnand %p1247_p5, %p1244_p3 }
  0x2c   : > { %1252 = shalt.err (!%p1249_p7)
}
  0x2d   : > { %s1253_s22 = scalar_lea.vmem %s326_s25, 256  ;;  %p1261_p2 = scmp.lt.s32.totalorder %s326_s25, %s326_s25 }
  0x2e   : > { %p1254_p9 = scmp.ne.s32.totalorder %s326_s25, %s1253_s22  ;;  %p1262_p6 = scmp.lt.s32.totalorder %s1253_s22, %s1253_s22 }
  0x30   : > { %p1256_p10 = pnand %p1254_p9, %p1989_p13  ;;  %p1263_p4 = por %p1262_p6, %p1261_p2 }
  0x32   : > { %p1257_p1 = pneg %p1256_p10 }
  0x34   : > { %p1264_p8 = pnand %p1263_p4, %p1257_p1 }
  0x36   : > { %1267 = shalt.err (!%p1264_p8)
}
  0x37   : > { %s1979_s28 = smov 64   ;;  %s1980_s29 = smov 4  }
  0x38   : > { %1149 = dma.hbm_to_vmem [thread:$0]  (!%p1635_p11), %s2010_s3, 256, %s326_s25, [#allocation11], %s1979_s28, %s1979_s28, %s1980_s29  }
  0x39   : > { %p48_p1 = scmp.ge.s32.totalorder %s46_s27, 2  ;;  %s55_s11 = sadd.s32 1, %s1496_s15 }
  0x3a   : > { %p62_p2 = scmp.ne.s32.totalorder %s1496_s15, %s1492_s14  ;;  %p63_p4 = scmp.eq.s32.totalorder %s1508_s18, 0 }
  0x3b   : > { %s2047_s27 = smov (%p48_p1, %s46_s27), 0  ;;  %p2012_p8 = scmp.eq.s32.totalorder %s1607_s19, 1 }
  0x3c   : > { %2011 = sst [smem:[#allocation25_spill]] %s2047_s27  ;;  %p64_p6 = por %p63_p4, %p62_p2 }
  0x3d   : > { %p1673_p10 = por %p2012_p8, %p62_p2  ;;  %s50_s20 = ssub.s32 %s1504_s17, %s2047_s27 }
  0x3e   : > { %p1172_p12 = scmp.lt.s32.totalorder %s1508_s18, 2  ;;  %p53_p0 = scmp.eq.s32.totalorder %s50_s20, 0 }
  0x3f   : > { %s2013_s12 = scalar_select %p1673_p10, 1, 0 }
  0x40   : > { %s1982_s24 = sand.u32 1, %s1496_s15   ;;  %s1686_s22 = sshll.u32 %s1504_s17, 6 }
  0x41   : > { %s1683_s25 = sshll.u32 %s1982_s24, 2  ;;  %p1691_p3 = pnand %p1172_p12, %p64_p6 }
  0x42   : > { %s1689_s30 = scalar_select %p53_p0, %s1496_s15, %s55_s11  }
  0x43   : > { %s2015_s28 = scalar_select %p1691_p3, 1, 0 }
  0x44   : > { %2014 = sst [smem:[#allocation26_spill]] %s1689_s30  ;;  %s383_s29 = sand.u32 1, %s1508_s18  }
  0x45   : > { %s2016_s1 = sld [smem:[#allocation27_spill]]  ;;  %s387_s24 = scalar_lea.vmem [#allocation7], %s1683_s25 }
  0x46   : > { %s394_s17 = sshll.u32 %s387_s24, 4  ;;  %s1513_s11 = smov [#allocation12]   ;;  %s1703_s17 = int_to_ptr.vmem [resolvable:$true] %s394_s17 }
  0x47   : > { %s1705_s30 = sshll.u32 %s1513_s11, 4  ;;  %s1707_s13 = scalar_lea.sflag [#allocation8], %s383_s29  ;;  %s348_s30 = int_to_ptr.vmem [resolvable:$true] %s1705_s30 }
  0x48   : > { %p1713_p7 = pneg %p1691_p3 }
  0x4a   : > { %s2017_s3 = scalar_select %p1713_p7, 1, 0 }
  0x4b   : > { %s1700_s20 = scalar_lea.hbm %s2016_s1, %s1686_s22  ;;  %s1273_s18 = scalar_lea.hbm %s2016_s1, 128 }
  0x4c   : > { %s1268_s9 = scalar_lea.hbm %s1700_s20, 64  ;;  %p1274_p2 = scmp.lt.u32.totalorder %s1700_s20, %s2016_s1 }
  0x4d   : > { %p1269_p5 = scmp.ne.s32.totalorder %s1700_s20, %s1268_s9  ;;  %p1275_p4 = scmp.lt.u32.totalorder %s1273_s18, %s1268_s9 }
  0x4e   : > { %p1277_p8 = scmp.lt.u32.totalorder %s1268_s9, %s1700_s20 }
  0x4f   : > { %p1271_p9 = pnand %p1713_p7, %p1269_p5  ;;  %p1276_p6 = por %p1275_p4, %p1274_p2 }
  0x51   : > { %p1272_p1 = pneg %p1271_p9  ;;  %p1278_p12 = por %p1277_p8, %p1276_p6 }
  0x53   : > { %p1279_p0 = pnand %p1278_p12, %p1272_p1 }
  0x55   : > { %1282 = shalt.err (!%p1279_p0)
}
  0x56   : > { %s1283_s29 = scalar_lea.vmem %s1703_s17, 64  ;;  %s1514_s27 = smov [#allocation7]  }
  0x57   : > { %p1284_p5 = scmp.ne.s32.totalorder %s1703_s17, %s1283_s29  ;;  %s1288_s24 = sshll.u32 %s1514_s27, 4  ;;  %s1289_s24 = int_to_ptr.vmem [resolvable:$false] %s1288_s24 }
  0x58   : > { %s1290_s10 = scalar_lea.vmem %s1289_s24, 128  ;;  %p1291_p10 = scmp.lt.s32.totalorder %s1703_s17, %s1289_s24 }
  0x59   : > { %p1286_p9 = pnand %p1284_p5, %p1713_p7  ;;  %p1292_p11 = scmp.lt.s32.totalorder %s1290_s10, %s1283_s29 }
  0x5b   : > { %p1287_p13 = pneg %p1286_p9  ;;  %p1293_p2 = por %p1292_p11, %p1291_p10 }
  0x5d   : > { %p1294_p4 = pnand %p1293_p2, %p1287_p13 }
  0x5f   : > { %1297 = shalt.err (!%p1294_p4)
}
  0x60   : > { %1159 = dma.hbm_to_vmem [thread:$0]  (!%p1691_p3), %s1700_s20, 64, %s1703_s17, %s1707_s13  }
  0x61   : > { %s2018_s7 = sld [smem:[#allocation29_spill]]  ;;  %p2019_p11 = scmp.ne.s32.totalorder %s2009_s26, 0 }
  0x63   : > { %p2020_p13 = pneg %p2019_p11 }
  0x67   : > { %s1298_s11 = scalar_lea.hbm %s2018_s7, 256 }
  0x68   : > { %p1299_p1 = scmp.ne.s32.totalorder %s2018_s7, %s1298_s11  ;;  %p1305_p8 = scmp.lt.u32.totalorder %s1298_s11, %s2018_s7 }
  0x6a   : > { %p1301_p10 = pnand %p1299_p1, %p2020_p13 }
  0x6c   : > { %p1302_p6 = pneg %p1301_p10 }
  0x6e   : > { %p1307_p12 = pnand %p1305_p8, %p1302_p6 }
  0x70   : > { %1310 = shalt.err (!%p1307_p12)
}
  0x71   : > { %s1311_s17 = scalar_lea.vmem %s348_s30, 256  ;;  %p2021_p5 = pmov %p2020_p13 }
  0x72   : > { %p1312_p0 = scmp.ne.s32.totalorder %s348_s30, %s1311_s17  ;;  %p1319_p4 = scmp.lt.s32.totalorder %s348_s30, %s348_s30 }
  0x73   : > { %p1320_p3 = scmp.lt.s32.totalorder %s1311_s17, %s1311_s17 }
  0x74   : > { %p1314_p9 = pnand %p1312_p0, %p2021_p5 }
  0x75   : > { %p1321_p7 = por %p1320_p3, %p1319_p4 }
  0x76   : > { %p1315_p2 = pneg %p1314_p9 }
  0x78   : > { %p1322_p1 = pnand %p1321_p7, %p1315_p2 }
  0x7a   : > { %1325 = shalt.err (!%p1322_p1)
}
  0x7b   : > { %s2022_s1 = smov 4   ;;  %s2023_s20 = smov 64  }
  0x7c   : > { %1152 = dma.hbm_to_vmem [thread:$0]  (!%p2019_p11), %s2018_s7, 256, %s348_s30, [#allocation11], %s2023_s20, %s2023_s20, %s2022_s1  }
  0x7d   : > { %s1765_s27 = scalar_lea.hbm %s1964_s0, %s1686_s22  ;;  %s368_s26 = scalar_lea.vmem [#allocation4], %s1683_s25 }
  0x7e   : > { %s376_s29 = sshll.u32 %s368_s26, 4  ;;  %s1774_s10 = scalar_lea.hbm %s1966_s2, %s1686_s22  ;;  %s1768_s29 = int_to_ptr.vmem [resolvable:$true] %s376_s29 }
  0x7f   : > { %s2024_s9 = sand.u32 1, %s1496_s15   ;;  %s1326_s1 = scalar_lea.hbm %s1765_s27, 64 }
  0x80   : > { %s365_s30 = scalar_lea.sflag [#allocation5], %s2024_s9  ;;  %p1327_p3 = scmp.ne.s32.totalorder %s1765_s27, %s1326_s1 }
  0x81   : > { %p2025_p7 = scmp.ne.s32.totalorder %s2017_s3, 0  ;;  %s1331_s11 = scalar_lea.hbm %s1964_s0, 128 }
  0x82   : > { %p1332_p10 = scmp.lt.u32.totalorder %s1765_s27, %s1964_s0  ;;  %p1333_p6 = scmp.lt.u32.totalorder %s1331_s11, %s1326_s1 }
  0x83   : > { %p1329_p11 = pnand %p1327_p3, %p2025_p7  ;;  %p1335_p12 = scmp.lt.u32.totalorder %s1326_s1, %s1765_s27 }
  0x84   : > { %p1334_p8 = por %p1333_p6, %p1332_p10 }
  0x85   : > { %p1330_p13 = pneg %p1329_p11 }
  0x86   : > { %p1336_p0 = por %p1335_p12, %p1334_p8 }
  0x88   : > { %p1337_p5 = pnand %p1336_p0, %p1330_p13 }
  0x8a   : > { %1340 = shalt.err (!%p1337_p5)
}
  0x8b   : > { %s1341_s22 = scalar_lea.vmem %s1768_s29, 64  ;;  %s1515_s24 = smov [#allocation4]  }
  0x8c   : > { %p1342_p9 = scmp.ne.s32.totalorder %s1768_s29, %s1341_s22  ;;  %s1346_s17 = sshll.u32 %s1515_s24, 4  ;;  %s1347_s17 = int_to_ptr.vmem [resolvable:$false] %s1346_s17 }
  0x8d   : > { %s1348_s7 = scalar_lea.vmem %s1347_s17, 128  ;;  %p1349_p1 = scmp.lt.s32.totalorder %s1768_s29, %s1347_s17 }
  0x8e   : > { %p1344_p2 = pnand %p1342_p9, %p2025_p7  ;;  %p1350_p3 = scmp.lt.s32.totalorder %s1348_s7, %s1341_s22 }
  0x90   : > { %p1345_p4 = pneg %p1344_p2  ;;  %p1351_p11 = por %p1350_p3, %p1349_p1 }
  0x92   : > { %p1352_p10 = pnand %p1351_p11, %p1345_p4 }
  0x94   : > { %1355 = shalt.err (!%p1352_p10)
}
  0x95   : > { %p2026_p13 = scmp.ne.s32.totalorder %s2015_s28, 0  ;;  %s405_s9 = scalar_lea.vmem [#allocation9], %s1683_s25 }
  0x96   : > { %s412_s1 = sshll.u32 %s405_s9, 4  ;;  %s1356_s20 = scalar_lea.hbm %s1774_s10, 64  ;;  %s413_s1 = int_to_ptr.vmem [resolvable:$true] %s412_s1 }
  0x97   : > { %1156 = dma.hbm_to_vmem [thread:$0]  (!%p2026_p13), %s1765_s27, 64, %s1768_s29, %s365_s30  }
  0x98   : > { %p1357_p6 = scmp.ne.s32.totalorder %s1774_s10, %s1356_s20  ;;  %s1361_s26 = scalar_lea.hbm %s1966_s2, 128 }
  0x99   : > { %p1362_p0 = scmp.lt.u32.totalorder %s1774_s10, %s1966_s2  ;;  %p1363_p5 = scmp.lt.u32.totalorder %s1361_s26, %s1356_s20 }
  0x9a   : > { %p1359_p8 = pnand %p1357_p6, %p2025_p7  ;;  %p1365_p2 = scmp.lt.u32.totalorder %s1356_s20, %s1774_s10 }
  0x9b   : > { %p1364_p9 = por %p1363_p5, %p1362_p0 }
  0x9c   : > { %p1360_p12 = pneg %p1359_p8 }
  0x9d   : > { %p1366_p4 = por %p1365_p2, %p1364_p9 }
  0x9f   : > { %p1367_p1 = pnand %p1366_p4, %p1360_p12 }
  0xa1   : > { %1370 = shalt.err (!%p1367_p1)
}
  0xa2   : > { %s1371_s25 = scalar_lea.vmem %s413_s1, 64  ;;  %s1516_s27 = smov [#allocation9]  }
  0xa3   : > { %p1372_p3 = scmp.ne.s32.totalorder %s413_s1, %s1371_s25  ;;  %s1376_s29 = sshll.u32 %s1516_s27, 4  ;;  %s1377_s29 = int_to_ptr.vmem [resolvable:$false] %s1376_s29 }
  0xa4   : > { %s1378_s30 = scalar_lea.vmem %s1377_s29, 128  ;;  %p1379_p6 = scmp.lt.s32.totalorder %s413_s1, %s1377_s29 }
  0xa5   : > { %p1374_p11 = pnand %p1372_p3, %p2025_p7  ;;  %p1380_p8 = scmp.lt.s32.totalorder %s1378_s30, %s1371_s25 }
  0xa7   : > { %p1375_p10 = pneg %p1374_p11  ;;  %p1381_p13 = por %p1380_p8, %p1379_p6 }
  0xa9   : > { %p1382_p0 = pnand %p1381_p13, %p1375_p10 }
  0xab   : > { %1385 = shalt.err (!%p1382_p0)
}
  0xac   : > { %p2027_p5 = scmp.ne.s32.totalorder %s2015_s28, 0  ;;  %p2028_p12 = scmp.ne.s32.totalorder %s2008_s23, 0 }
  0xad   : > { %s1821_s3 = sand.u32 (!%p2028_p12), 1, %s1492_s14   ;;  %p2029_p7 = scmp.ne.s32.totalorder (!%p2028_p12), %s2005_s21, 0 }
  0xae   : > { %1162 = dma.hbm_to_vmem [thread:$0]  (!%p2027_p5), %s1774_s10, 64, %s413_s1, %s1707_s13  }
  0xaf   : > { %421 = sbr.rel (%p2028_p12) target bundleno = 1186 (0x4a2), region = 56  ;;  %s1824_s17 = sshll.u32 (!%p2028_p12), %s1821_s3, 2 }
  0xb0   : > { %s424_s7 = scalar_lea.sflag (!%p2028_p12), [#allocation5], %s1821_s3  ;;  %s427_s9 = scalar_lea.vmem (!%p2028_p12), [#allocation4], %s1824_s17 }
  0xb6   : > { %1467 = dma.done.wait (%p2029_p7), %s424_s7, 64  }
  0xb7   : > { %1469 = vsyncadd (%p2029_p7), %s424_s7, 4294967232  ;;  %s432_s13 = sand.u32 1, %s1607_s19   ;;  %s436_s28 = scalar_lea.vmem [#allocation7], %s1824_s17 }
  0xb8   : > { %s433_s23 = scalar_lea.sflag [#allocation8], %s432_s13 }
  0xb9   : > { %1471 = dma.done.wait (%p2029_p7), %s433_s23, 128  }
  0xba   : > { %1473 = vsyncadd (%p2029_p7), %s433_s23, 4294967168  ;;  %s445_s10 = scalar_lea.vmem [#allocation9], %s1824_s17  ;;  %p2030_p13 = scmp.eq.s32.totalorder %s1607_s19, 0 }
  0xbc   : > { %1475 = dma.done.wait (%p2030_p13), [#allocation11], 512   ;;  %p2031_p9 = pmov %p2030_p13 }
  0xbd   : > { %v1517_v0 = vmov 0.0   ;;  %vm1518_vm0 = vmmov 0   ;;  %v1230_v1 = vld [vmem:[%s1969_s5] sm:$0xff]   ;;  %v1231_v2 = vld [vmem:[%s1969_s5 + $0x8] sm:$0xff]   ;;  %vm534_vm1 = vcmask 261120   ;;  %v1232_v4 = vld [vmem:[#allocation10] sm:$0xff]  }
  0xbe   : > { %1477 = vsyncadd (%p2031_p9), [#allocation11], 4294966784  ;;  %1092 = vmatprep.subr.bf16.mxu0 %v1517_v0  ;;  %1096 = vmatprep.mubr.msk.bf16.mxu0 %vm1518_vm0, %v1517_v0  ;;  %v510_v3 = vld [vmem:[%s436_s28] sm:$0xf]  ;;  %v1233_v5 = vld [vmem:[#allocation10 + $0x8] sm:$0xff]   ;;  %vm646_vm2 = vcmask 257024  }
  0xbf   : > { %1100 = vmatprep.subr.bf16.mxu1 %v1517_v0  ;;  %1104 = vmatprep.mubr.msk.bf16.mxu1 %vm1518_vm0, %v1517_v0  ;;  %v650_v6 = vld [vmem:[%s427_s9] sm:$0xf]  ;;  %v1234_v7 = vld [vmem:[#allocation12] sm:$0xff]   ;;  %v1235_v8 = vld [vmem:[#allocation12 + $0x8] sm:$0xff]   ;;  %vm784_vm3 = vcmask 1043456   ;;  %vm767_vm4 = vcmask 64512  }
  0xc0   : > { %1093 = vmatpush3.bf16.msra.mxu0 %v1230_v1  ;;  %1101 = vmatpush3.bf16.msra.mxu1 %v1234_v7  ;;  %v578_v9 = vld [vmem:[%s445_s10] sm:$0xf]  ;;  %v1059_v10 = vld [vmem:[%s1970_s6] ss:$0 sm:$0xff]  ;;  %s1057_s27 = sshll.u32 %s1821_s3, 3  ;;  %s1075_s30 = sshll.u32 %s1500_s16, 7 }
  0xc1   : > { %1094 = vmatprep.subr.bf16.mxu0 %v1517_v0  ;;  %1102 = vmatprep.subr.bf16.mxu1 %v1517_v0  ;;  %v1067_v17 = vld [vmem:[%s1968_s4] ss:$0 sm:$0xff]  ;;  %s504_s29 = scalar_lea.vmem [#allocation14], %s1057_s27  ;;  %s2032_s9 = sld [smem:[#allocation31_spill]] }
  0xc2   : > { %v1063_v27 = vld [vmem:[%s1972_s8] ss:$0 sm:$0xff]  ;;  %s864_s23 = sshll.u32 %s504_s29, 4  ;;  %s836_s28 = scalar_lea.sflag [#allocation15], %s1821_s3  ;;  %s865_s23 = int_to_ptr.vmem [resolvable:$true] %s864_s23 }
  0xc3   : > { %s1386_s10 = scalar_lea.vmem %s865_s23, 128  ;;  %p2033_p4 = scmp.ne.s32.totalorder %s2013_s12, 0 }
  0xc4   : > { %1095 = vmatpush3.bf16.msra.mxu0 %v1231_v2  ;;  %1103 = vmatpush3.bf16.msra.mxu1 %v1235_v8  ;;  %p1387_p2 = scmp.ne.s32.totalorder %s865_s23, %s1386_s10  ;;  %s1519_s1 = smov [#allocation14]  }
  0xc5   : > { %1108 = vmatprep.subr.bf16.mxu0 %v1517_v0  ;;  %1116 = vmatprep.subr.bf16.mxu1 %v1517_v0  ;;  %s1390_s20 = sshll.u32 %s1519_s1, 4  ;;  %s1391_s20 = int_to_ptr.vmem [resolvable:$false] %s1390_s20 }
  0xc6   : > { %p1388_p1 = pnand %p1387_p2, %p2033_p4  ;;  %s1392_s21 = scalar_lea.vmem %s1391_s20, 256 }
  0xc7   : > { %1097 = vmatmul.mubr.msk.bf16.vlgmr.msra.gmra.mrb[0].mxu0 %vm534_vm1, %v510_v3  ;;  %1105 = vmatmul.mubr.msk.bf16.vlgmr.msra.gmra.mrb[0].mxu1 %vm534_vm1, %v578_v9  ;;  %s1887_s13 = scalar_lea.hbm %s2032_s9, %s1075_s30  ;;  %p1393_p11 = scmp.lt.s32.totalorder %s865_s23, %s1391_s20 }
  0xc8   : > { %1109 = vmatpush3.bf16.msra.mxu0 %v1232_v4  ;;  %1112 = vmatprep.mubr.msk.bf16.mxu0 %vm1518_vm0, %v1517_v0  ;;  %p1389_p3 = pneg %p1388_p1  ;;  %p1394_p10 = scmp.lt.s32.totalorder %s1392_s21, %s1386_s10 }
  0xc9   : > { %1110 = vmatprep.subr.bf16.mxu0 %v1517_v0  ;;  %1118 = vmatprep.mubr.msk.bf16.mxu1 %vm1518_vm0, %v1517_v0 }
  0xca   : > { %p1395_p6 = por %p1394_p10, %p1393_p11 }
  0xcc   : > { %1111 = vmatpush3.bf16.msra.mxu0 %v1233_v5  ;;  %p1396_p8 = pnand %p1395_p6, %p1389_p3 }
  0xcd   : > { %1122 = vmatprep.subr.bf16.mxu0 %v1517_v0 }
  0xcf   : > { %1113 = vmatmul.mubr.msk.bf16.vlgmr.msra.gmra.mrb[4].mxu0 %vm534_vm1, %v650_v6 }
  0xd0   : > { %1124 = vmatprep.mubr.msk.bf16.mxu0 %vm1518_vm0, %v1517_v0 }
 0x19a   : > { %v572_v11 = vpop.f32.mrb[0].mxu0  ;;  %v639_v28 = vpop.f32.mrb[0].mxu1 }
 0x19b   : > { %v573_v12 = vadd.f32 %v1059_v10, %v572_v11  ;;  %v1098_v13 = vpop.f32.mrb[1].mxu0  ;;  %v640_v29 = vadd.f32 %v1063_v27, %v639_v28  ;;  %v1106_v30 = vpop.f32.mrb[1].mxu1 }
 0x19c   : > { %v575_v14 = vpop.f32.mrb[2].mxu0  ;;  %v642_v31 = vpop.f32.mrb[2].mxu1 }
 0x19d   : > { %v645_v15 = vpack.c.bf16 %v573_v12, %v573_v12  ;;  %v1099_v16 = vpop.f32.mrb[3].mxu0  ;;  %v648_v32 = vpack.c.bf16 %v640_v29, %v640_v29  ;;  %v1107_v33 = vpop.f32.mrb[3].mxu1 }
 0x19f   : > { %647 = vst.msk [vmem:[#allocation2] sm:$0xf] %vm646_vm2, %v645_v15  ;;  %649 = vst.msk [vmem:[#allocation3] sm:$0xf] %vm646_vm2, %v648_v32 }
 0x1a2   : > { %v712_v18 = vpop.f32.mrb[4].mxu0 }
 0x1a3   : > { %v713_v19 = vadd.f32 %v1067_v17, %v712_v18  ;;  %v1114_v20 = vpop.f32.mrb[5].mxu0 }
 0x1a4   : > { %v715_v21 = vpop.f32.mrb[6].mxu0 }
 0x1a5   : > { %v1115_v22 = vpop.f32.mrb[7].mxu0  ;;  %v718_v24 = vmul.f32 0.17677669, %v713_v19 }
 0x1a6   : > { %v720_v23 = vld [vmem:[#allocation2] sm:$0xf]  ;;  %v780_v34 = vld [vmem:[#allocation3] sm:$0xf] }
 0x1a7   : > { %v725_v25 = vsel %vm534_vm1, %v720_v23, 0  ;;  %v719_v26 = vpack.c.bf16 %v718_v24, %v718_v24  ;;  %v786_v35 = vsel %vm784_vm3, %v780_v34, 0 }
 0x1a8   : > { %1117 = vmatpush3.bf16.xpose.msra.mxu1 %v725_v25  ;;  %1123 = vmatpush3.bf16.msra.mxu0 %v786_v35 }
 0x1af   : > { %1119 = vmatmul.mubr.msk.bf16.vlgmr.msra.gmra.mrb[4].mxu1 %vm534_vm1, %v719_v26 }
 0x282   : > { %v761_v36 = vpop.f32.mrb[4].mxu1 }
 0x283   : > { %v1120_v37 = vpop.f32.mrb[5].mxu1  ;;  %v768_v38 = vsel %vm767_vm4, %v761_v36, -inf }
 0x284   : > { %769 = vmax.xlane.f32.xlu0 %v768_v38  ;;  %v764_v39 = vpop.f32.mrb[6].mxu1 }
 0x285   : > { %v1121_v40 = vpop.f32.mrb[7].mxu1 }
 0x311   : > { %v770_v41 = vpop.xlane.xlu0 %769 }
 0x312   : > { %v771_v42 = vsub.f32 %v761_v36, %v770_v41 }
 0x314   : > { %v772_v43 = vmul.f32 1.442695, %v771_v42 }
 0x316   : > { %1236 = vpow2.f32 %v772_v43 }
 0x320   : > { %v1237_v44 = vpop.eup %1236 }
 0x321   : > { %v774_v45 = vsel %vm767_vm4, %v1237_v44, 0.0 }
 0x322   : > { %775 = vadd.xlane.f32.xlu0 %v774_v45 }
 0x3af   : > { %v776_v46 = vpop.xlane.xlu0 %775 }
 0x3b0   : > { %1238 = vrcp.f32 %v776_v46 }
 0x3ba   : > { %v1239_v47 = vpop.eup %1238 }
 0x3bb   : > { %v778_v48 = vmul.f32 %v1239_v47, %v1237_v44 }
 0x3bd   : > { %v779_v49 = vpack.c.bf16 %v778_v48, %v778_v48  ;;  %829 = vst.msk [vmem:[%s504_s29] sm:$0xff] %vm767_vm4, %v778_v48 }
 0x3bf   : > { %1125 = vmatmul.mubr.msk.bf16.vlgmr.msra.gmra.mrb[8].mxu0 %vm767_vm4, %v779_v49 }
 0x3c0   : > { %1399 = shalt.err (!%p1396_p8)
}
 0x3c1   : > { %s1400_s18 = scalar_lea.hbm %s1887_s13, 128  ;;  %s1404_s26 = scalar_lea.hbm %s2032_s9, 256 }
 0x3c2   : > { %p1401_p0 = scmp.ne.s32.totalorder %s1887_s13, %s1400_s18  ;;  %p1405_p7 = scmp.lt.u32.totalorder %s1887_s13, %s2032_s9 }
 0x3c3   : > { %p1406_p13 = scmp.lt.u32.totalorder %s1404_s26, %s1400_s18  ;;  %p1408_p2 = scmp.lt.u32.totalorder %s1400_s18, %s1887_s13 }
 0x3c4   : > { %p1402_p5 = pnand %p1401_p0, %p2033_p4 }
 0x3c5   : > { %p1407_p9 = por %p1406_p13, %p1405_p7 }
 0x3c6   : > { %p1403_p12 = pneg %p1402_p5 }
 0x3c7   : > { %p1409_p1 = por %p1408_p2, %p1407_p9 }
 0x3c9   : > { %p1410_p3 = pnand %p1409_p1, %p1403_p12 }
 0x3cb   : > { %1413 = shalt.err (!%p1410_p3)
}
 0x3cc   : > { %1143 = dma.vmem_to_hbm [thread:$0]  (%p2033_p4), %s865_s23, 128, %s1887_s13, %s836_s28  }
 0x3cd   : > { %s497_s25 = scalar_lea.vmem [#allocation13], %s1057_s27  ;;  %s2034_s10 = sld [smem:[#allocation30_spill]] }
 0x3ce   : > { %s850_s29 = sshll.u32 %s497_s25, 4  ;;  %s831_s13 = scalar_lea.sflag [#allocation6], %s1821_s3  ;;  %s1916_s29 = int_to_ptr.vmem [resolvable:$true] %s850_s29 }
 0x3cf   : > { %s1414_s23 = scalar_lea.vmem %s1916_s29, 128  ;;  %s1520_s16 = smov [#allocation13]  }
 0x3d0   : > { %p1415_p11 = scmp.ne.s32.totalorder %s1916_s29, %s1414_s23  ;;  %s1418_s27 = sshll.u32 %s1520_s16, 4  ;;  %s1419_s27 = int_to_ptr.vmem [resolvable:$false] %s1418_s27 }
 0x3d1   : > { %p1421_p8 = scmp.lt.s32.totalorder %s1916_s29, %s1419_s27 }
 0x3d2   : > { %p1416_p10 = pnand %p1415_p11, %p2033_p4 }
 0x3d3   : > { %s1914_s1 = scalar_lea.hbm %s2034_s10, %s1075_s30  ;;  %s1420_s30 = scalar_lea.vmem %s1419_s27, 256 }
 0x3d4   : > { %p1417_p6 = pneg %p1416_p10  ;;  %p1422_p0 = scmp.lt.s32.totalorder %s1420_s30, %s1414_s23 }
 0x3d6   : > { %p1423_p5 = por %p1422_p0, %p1421_p8 }
 0x3d8   : > { %p1424_p12 = pnand %p1423_p5, %p1417_p6 }
 0x492   : > { %v822_v50 = vpop.f32.mrb[8].mxu0 }
 0x493   : > { %828 = vst.msk [vmem:[%s497_s25] sm:$0xff] %vm534_vm1, %v822_v50  ;;  %v1126_v51 = vpop.f32.mrb[9].mxu0 }
 0x494   : > { %v825_v52 = vpop.f32.mrb[10].mxu0 }
 0x495   : > { %1427 = shalt.err (!%p1424_p12)
}
 0x496   : > { %s1428_s3 = scalar_lea.hbm %s1914_s1, 128  ;;  %s1432_s21 = scalar_lea.hbm %s2034_s10, 256 }
 0x497   : > { %p1429_p7 = scmp.ne.s32.totalorder %s1914_s1, %s1428_s3  ;;  %p1433_p2 = scmp.lt.u32.totalorder %s1914_s1, %s2034_s10 }
 0x498   : > { %p1434_p1 = scmp.lt.u32.totalorder %s1432_s21, %s1428_s3  ;;  %p1436_p11 = scmp.lt.u32.totalorder %s1428_s3, %s1914_s1 }
 0x499   : > { %p1430_p13 = pnand %p1429_p7, %p2033_p4 }
 0x49a   : > { %p1435_p3 = por %p1434_p1, %p1433_p2 }
 0x49b   : > { %p1431_p9 = pneg %p1430_p13 }
 0x49c   : > { %p1437_p10 = por %p1436_p11, %p1435_p3 }
 0x49e   : > { %p1438_p6 = pnand %p1437_p10, %p1431_p9 }
 0x4a0   : > { %1441 = shalt.err (!%p1438_p6)
}
 0x4a1   : > { %1142 = dma.vmem_to_hbm [thread:$0]  (%p2033_p4), %s1916_s29, 128, %s1914_s1, %s831_s13   ;;  %v1127_v53 = vpop.f32.mrb[11].mxu0 }
 0x4a2 PF: > { %s2035_s11 = sld [smem:[#allocation21_spill]]  ;;  %s2036_s26 = sld [smem:[#allocation24_spill]] }
 0x4a3   : > { %s2037_s22 = sld [smem:[#allocation23_spill]] }
 0x4a8   : > { %s876_s24 = sand.u32 1, %s2035_s11   ;;  %p2038_p8 = scmp.ne.s32.totalorder %s2036_s26, 0 }
 0x4a9   : > { %p2039_p0 = scmp.ge.s32.totalorder %s2037_s22, 2  ;;  %s877_s25 = scalar_lea.sflag [#allocation6], %s876_s24 }
 0x4ab   : > { %p1164_p5 = pnand %p2039_p0, %p2038_p8 }
 0x4ad   : > { %1479 = dma.done.wait (!%p1164_p5), %s877_s25, 128  }
 0x4ae   : > { %1481 = vsyncadd (!%p1164_p5), %s877_s25, 4294967168  ;;  %s886_s17 = scalar_lea.sflag [#allocation15], %s876_s24 }
 0x4af   : > { %1483 = dma.done.wait (!%p1164_p5), %s886_s17, 128  }
 0x4b0   : > { %1485 = vsyncadd (!%p1164_p5), %s886_s17, 4294967168  ;;  %s34_s18 = sadd.s32 1, %s2037_s22   ;;  %s2040_s12 = sld [smem:[#allocation26_spill]] }
 0x4b1   : > { %p31_p12 = scmp.ge.s32.totalorder %s34_s18, 4   ;;  %s2041_s16 = sld [smem:[#allocation22_spill]] }
 0x4b2   : > { %s2042_s17 = sld [smem:[#allocation25_spill]]  ;;  %s2043_s13 = smov %s1492_s14 }
 0x4b3   : > { %s2044_s14 = smov %s1496_s15  ;;  %33 = sbr.rel (!%p31_p12) target bundleno = 17 (0x11), region = 154 }
 0x4b6   : > { %s2045_s15 = smov %s2040_s12 }
 0x4ba   :  { %891 = vsyncpa [#allocation5], 1 }
 0x4bb   :  { %893 = vsyncpa [#allocation5 + $0x1], 1 }
 0x4bc   :  { %894 = vsyncpa [#allocation8], 1 }
 0x4bd   :  { %896 = vsyncpa [#allocation8 + $0x1], 1 }
 0x4be   :  { %897 = vsyncpa [#allocation11], 1 }
 0x4bf   :  { %898 = vsyncpa [#allocation6], 1 }
 0x4c0   :  { %900 = vsyncpa [#allocation6 + $0x1], 1 }
 0x4c1   :  { %901 = vsyncpa [#allocation15], 1 }
 0x4c2   :  { %903 = vsyncpa [#allocation15 + $0x1], 1 }

</bundles_post_ra>
